<compile_context>
chip_gen: v6e
topology: v6e:2x2x1
jax: 0.10.0
libtpu: 0.0.40
codegen_flags: <defaults>
</compile_context>

<pallas_src>
import functools
from typing import NamedTuple

import jax
import jax.numpy as jnp
from jax import lax
from jax.experimental import pallas as pl
from jax.experimental.pallas import tpu as pltpu


LANE = 128          # vreg lane width: feature (last) dims padded to this
SUBLANE_F32 = 8     # f32 sublane granularity (activation refs stay f32)
SUB_ROWS = 128      # batch sub-block inside a tile (bounds vreg pressure)


def _round_up(x: int, m: int) -> int:
    return ((x + m - 1) // m) * m


class ActorParams(NamedTuple):
    """Pre-padded / pre-cast weights produced once by prepare_params()."""
    w1s: jax.Array   # (S, H_pad)        compute dtype (bf16)
    w1a: jax.Array   # (A, H_pad)        compute dtype
    b1:  jax.Array   # (1, H_pad)        f32
    w2:  jax.Array   # (H_pad, H_pad)    compute dtype
    b2:  jax.Array   # (1, H_pad)        f32
    w3:  jax.Array   # (H_pad, OUT_pad)  compute dtype
    b3:  jax.Array   # (1, OUT_pad)      f32
    out_dim: int     # un-padded output width


def prepare_params(params, state_dim, *, lane_multiple=LANE,
                   compute_dtype=jnp.bfloat16) -> ActorParams:
    """One-time weight prep (hoisted out of forward per the perf review).

    Splits W1 into state/action halves (fusing the input concat), zero-pads
    feature dims to lane multiples (exact for a ReLU MLP) and casts matmul
    operands to bf16.  Biases stay f32 (v5e VPU has no bf16).

    NOTE: on v6e/v7x with a real hidden size (>=256) pass lane_multiple=256 so
    a weight tile fills the 2x256x256 MXU; 128 is already optimal on v5e.
    """
    w1, b1, w2, b2, w3, b3 = params
    S = state_dim
    A = w1.shape[0] - S
    H = w1.shape[1]
    OUT = w3.shape[1]
    H_pad = _round_up(H, lane_multiple)
    OUT_pad = _round_up(OUT, lane_multiple)

    def pad2(m, r, c):
        return jnp.pad(m, ((0, r - m.shape[0]), (0, c - m.shape[1])))

    return ActorParams(
        w1s=pad2(w1[:S], S, H_pad).astype(compute_dtype),
        w1a=pad2(w1[S:], A, H_pad).astype(compute_dtype),
        b1=pad2(b1, 1, H_pad).astype(jnp.float32),
        w2=pad2(w2, H_pad, H_pad).astype(compute_dtype),
        b2=pad2(b2, 1, H_pad).astype(jnp.float32),
        w3=pad2(w3, H_pad, OUT_pad).astype(compute_dtype),
        b3=pad2(b3, 1, OUT_pad).astype(jnp.float32),
        out_dim=OUT,
    )


def _actor_mlp_kernel(s_ref, a_ref, w1s_ref, w1a_ref, b1_ref,
                      w2_ref, b2_ref, w3_ref, b3_ref, o_ref,
                      *, sub_rows, n_sub):
    """Fused SAC-actor MLP tile.

    For each `sub_rows`-row sub-block of the batch tile:
      h1  = relu(states @ W1s + actions @ W1a + b1)  (concat fused as split W1)
      h2  = relu(h1 @ W2 + b2)
      out = h2 @ W3 + b3
    Matmul operands are bf16 (MXU native, cast in-kernel on the VPU);
    accumulation, bias and ReLU in f32.
    """
    cdt = w1s_ref.dtype
    w1s = w1s_ref[...]
    w1a = w1a_ref[...]
    b1 = b1_ref[...]
    w2 = w2_ref[...]
    b2 = b2_ref[...]
    w3 = w3_ref[...]
    b3 = b3_ref[...]

    def body(i, carry):
        r = i * sub_rows
        s = s_ref[pl.ds(r, sub_rows), :].astype(cdt)
        a = a_ref[pl.ds(r, sub_rows), :].astype(cdt)
        h1 = (jnp.dot(s, w1s, preferred_element_type=jnp.float32)
              + jnp.dot(a, w1a, preferred_element_type=jnp.float32)
              + b1)
        h1 = jnp.maximum(h1, 0.0)
        h2 = jnp.dot(h1.astype(cdt), w2,
                     preferred_element_type=jnp.float32) + b2
        h2 = jnp.maximum(h2, 0.0)
        out = jnp.dot(h2.astype(cdt), w3,
                      preferred_element_type=jnp.float32) + b3
        o_ref[pl.ds(r, sub_rows), :] = out.astype(o_ref.dtype)
        return carry

    # Unrolled inner loop over 128-row sub-blocks bounds live h1/h2 vregs.
    lax.fori_loop(0, n_sub, body, 0, unroll=True)


def actor_forward(states, actions, prepped: ActorParams, *, block_b=512,
                  out_dtype=jnp.float32):
    """Actor.forward(states, actions) -> model output, via one fused kernel."""
    B, S = states.shape
    A = actions.shape[1]
    H_pad = prepped.w2.shape[0]
    OUT_pad = prepped.w3.shape[1]
    OUT = prepped.out_dim

    # --- batch tiling --------------------------------------------------------
    tb_req = min(B, block_b)
    if tb_req >= SUB_ROWS:
        TB = _round_up(tb_req, SUB_ROWS)
        # v7x megacore: keep >= 2 grid steps whenever the batch allows so the
        # "parallel" batch axis actually shards across the two TensorCores.
        if B > SUB_ROWS:
            TB = min(TB, _round_up(-(-B // 2), SUB_ROWS))
        sub_rows = SUB_ROWS
    else:
        TB = _round_up(tb_req, SUBLANE_F32)
        sub_rows = TB
    n_sub = TB // sub_rows
    grid = (pl.cdiv(B, TB),)  # ragged last block: OOB rows never read back

    act_spec = lambda d: pl.BlockSpec((TB, d), lambda i: (i, 0))
    # Weights / biases are grid-invariant -> resident in VMEM, single-buffered.
    const_spec = lambda r, c: pl.BlockSpec((r, c), lambda i: (0, 0),
                                           pipeline_mode=pl.Buffered(1))

    kernel = functools.partial(_actor_mlp_kernel,
                               sub_rows=sub_rows, n_sub=n_sub)

    out = pl.pallas_call(
        kernel,
        out_shape=jax.ShapeDtypeStruct((B, OUT_pad), out_dtype),
        grid=grid,
        in_specs=[
            act_spec(S), act_spec(A),                            # activations
            const_spec(S, H_pad), const_spec(A, H_pad),          # W1 split
            const_spec(1, H_pad),                                # b1
            const_spec(H_pad, H_pad), const_spec(1, H_pad),      # W2, b2
            const_spec(H_pad, OUT_pad), const_spec(1, OUT_pad),  # W3, b3
        ],
        out_specs=pl.BlockSpec((TB, OUT_pad), lambda i: (i, 0)),
        compiler_params=pltpu.CompilerParams(
            # Batch axis is independent -> pipeline + megacore sharding.
            # TODO(synk): when block_b or the real hidden size grows, set
            # vmem_limit_bytes explicitly (v7x: 64 MiB physical / 32 MiB scoped
            # default; v5e: 16 MiB scoped default).
            dimension_semantics=("parallel",),
        ),
    )(states, actions, prepped.w1s, prepped.w1a, prepped.b1,
      prepped.w2, prepped.b2, prepped.w3, prepped.b3)

    # Column slice only (padded lanes); consumers that accept the padded
    # layout can take `out` directly.
    return out[:, :OUT]


def init_params(key, in_dim, hidden, out_dim):
    """Deterministic parameter init (scaled-normal), shapes (fan_in, fan_out)."""
    k1, k2, k3 = jax.random.split(key, 3)
    w1 = jax.random.normal(k1, (in_dim, hidden), jnp.float32) * (1.0 / jnp.sqrt(in_dim))
    b1 = jnp.zeros((1, hidden), jnp.float32)
    w2 = jax.random.normal(k2, (hidden, hidden), jnp.float32) * (1.0 / jnp.sqrt(hidden))
    b2 = jnp.zeros((1, hidden), jnp.float32)
    w3 = jax.random.normal(k3, (hidden, out_dim), jnp.float32) * (1.0 / jnp.sqrt(hidden))
    b3 = jnp.zeros((1, out_dim), jnp.float32)
    return (w1, b1, w2, b2, w3, b3)


def reference_forward(states, actions, params, compute_dtype=jnp.bfloat16):
    """Pure-JAX reference with the same bf16-operand / f32-accumulate recipe."""
    w1, b1, w2, b2, w3, b3 = params
    x = jnp.concatenate([states, actions], axis=-1)
    h1 = jnp.maximum(
        jnp.dot(x.astype(compute_dtype), w1.astype(compute_dtype),
                preferred_element_type=jnp.float32) + b1, 0.0)
    h2 = jnp.maximum(
        jnp.dot(h1.astype(compute_dtype), w2.astype(compute_dtype),
                preferred_element_type=jnp.float32) + b2, 0.0)
    return jnp.dot(h2.astype(compute_dtype), w3.astype(compute_dtype),
                   preferred_element_type=jnp.float32) + b3


if __name__ == "__main__":
    B, S, A, H = 8, 16, 8, 32   # batch, state_dim, action_dim, hidden
    OUT = A                     # policy head over action dim

    key = jax.random.PRNGKey(0)
    ks, ka, kp = jax.random.split(key, 3)
    states = jax.random.normal(ks, (B, S), jnp.float32)
    actions = jax.random.normal(ka, (B, A), jnp.float32)
    raw_params = init_params(kp, S + A, H, OUT)

    # One-time weight prep (pad / split / cast) -- not paid per forward call.
    prepped = jax.block_until_ready(prepare_params(raw_params, state_dim=S))

    out = jax.block_until_ready(actor_forward(states, actions, prepped))
    ref = reference_forward(states, actions, raw_params)

    assert out.shape == (B, OUT)
    assert jnp.allclose(out, ref, atol=1e-2, rtol=1e-2), \
        f"max abs err = {float(jnp.max(jnp.abs(out - ref)))}"

    print("KERNEL_OK")
</pallas_src>

<mosaic_0001>
module attributes {stable_mosaic.version = 11 : i64} {
  func.func @_actor_mlp_kernel(%arg0: i32, %arg1: memref<8x16xf32, #tpu.memory_space<vmem>>, %arg2: memref<8x8xf32, #tpu.memory_space<vmem>>, %arg3: memref<16x128xbf16, #tpu.memory_space<vmem>>, %arg4: memref<8x128xbf16, #tpu.memory_space<vmem>>, %arg5: memref<1x128xf32, #tpu.memory_space<vmem>>, %arg6: memref<128x128xbf16, #tpu.memory_space<vmem>>, %arg7: memref<1x128xf32, #tpu.memory_space<vmem>>, %arg8: memref<128x128xbf16, #tpu.memory_space<vmem>>, %arg9: memref<1x128xf32, #tpu.memory_space<vmem>>, %arg10: memref<8x128xf32, #tpu.memory_space<vmem>>) attributes {dimension_semantics = [#tpu.dimension_semantics<parallel>], iteration_bounds = array<i64: 1>, scalar_prefetch = 0 : i64, scratch_operands = 0 : i64, tpu.core_type = #tpu.core_type<tc>, window_params = [{transform_indices = @transform_0, window_bounds = array<i64: 8, 16>}, {transform_indices = @transform_1, window_bounds = array<i64: 8, 8>}, {pipeline_mode = #tpu.pipeline_mode<synchronous>, transform_indices = @transform_2, window_bounds = array<i64: 16, 128>}, {pipeline_mode = #tpu.pipeline_mode<synchronous>, transform_indices = @transform_3, window_bounds = array<i64: 8, 128>}, {pipeline_mode = #tpu.pipeline_mode<synchronous>, transform_indices = @transform_4, window_bounds = array<i64: 1, 128>}, {pipeline_mode = #tpu.pipeline_mode<synchronous>, transform_indices = @transform_5, window_bounds = array<i64: 128, 128>}, {pipeline_mode = #tpu.pipeline_mode<synchronous>, transform_indices = @transform_6, window_bounds = array<i64: 1, 128>}, {pipeline_mode = #tpu.pipeline_mode<synchronous>, transform_indices = @transform_7, window_bounds = array<i64: 128, 128>}, {pipeline_mode = #tpu.pipeline_mode<synchronous>, transform_indices = @transform_8, window_bounds = array<i64: 1, 128>}, {transform_indices = @transform_9, window_bounds = array<i64: 8, 128>}]} {
    %c0 = arith.constant 0 : index
    %c0_0 = arith.constant 0 : index
    %0 = vector.load %arg3[%c0, %c0_0] : memref<16x128xbf16, #tpu.memory_space<vmem>>, vector<16x128xbf16>
    %c0_1 = arith.constant 0 : index
    %c0_2 = arith.constant 0 : index
    %1 = vector.load %arg4[%c0_1, %c0_2] : memref<8x128xbf16, #tpu.memory_space<vmem>>, vector<8x128xbf16>
    %c0_3 = arith.constant 0 : index
    %c0_4 = arith.constant 0 : index
    %2 = vector.load %arg5[%c0_3, %c0_4] : memref<1x128xf32, #tpu.memory_space<vmem>>, vector<1x128xf32>
    %c0_5 = arith.constant 0 : index
    %c0_6 = arith.constant 0 : index
    %3 = vector.load %arg6[%c0_5, %c0_6] : memref<128x128xbf16, #tpu.memory_space<vmem>>, vector<128x128xbf16>
    %c0_7 = arith.constant 0 : index
    %c0_8 = arith.constant 0 : index
    %4 = vector.load %arg7[%c0_7, %c0_8] : memref<1x128xf32, #tpu.memory_space<vmem>>, vector<1x128xf32>
    %c0_9 = arith.constant 0 : index
    %c0_10 = arith.constant 0 : index
    %5 = vector.load %arg8[%c0_9, %c0_10] : memref<128x128xbf16, #tpu.memory_space<vmem>>, vector<128x128xbf16>
    %c0_11 = arith.constant 0 : index
    %c0_12 = arith.constant 0 : index
    %6 = vector.load %arg9[%c0_11, %c0_12] : memref<1x128xf32, #tpu.memory_space<vmem>>, vector<1x128xf32>
    %c0_i32 = arith.constant 0 : i32
    %c8_i32 = arith.constant 8 : i32
    %7 = arith.muli %c0_i32, %c8_i32 : i32
    %8 = arith.index_cast %7 : i32 to index
    %c0_13 = arith.constant 0 : index
    %9 = vector.load %arg1[%8, %c0_13] : memref<8x16xf32, #tpu.memory_space<vmem>>, vector<8x16xf32>
    %10 = arith.truncf %9 : vector<8x16xf32> to vector<8x16xbf16>
    %11 = arith.index_cast %7 : i32 to index
    %c0_14 = arith.constant 0 : index
    %12 = vector.load %arg2[%11, %c0_14] : memref<8x8xf32, #tpu.memory_space<vmem>>, vector<8x8xf32>
    %13 = arith.truncf %12 : vector<8x8xf32> to vector<8x8xbf16>
    %cst = arith.constant dense<0.000000e+00> : vector<8x128xf32>
    %14 = tpu.matmul %10, %0, %cst {dimension_numbers = #tpu.dot_dimension_numbers<[1], [0], [0], [1], [0, 0, 1, 1], [], []>} : vector<8x16xbf16>, vector<16x128xbf16>, vector<8x128xf32> -> vector<8x128xf32>
    %cst_15 = arith.constant dense<0.000000e+00> : vector<8x128xf32>
    %15 = tpu.matmul %13, %1, %cst_15 {dimension_numbers = #tpu.dot_dimension_numbers<[1], [0], [0], [1], [0, 0, 1, 1], [], []>} : vector<8x8xbf16>, vector<8x128xbf16>, vector<8x128xf32> -> vector<8x128xf32>
    %16 = arith.addf %14, %15 : vector<8x128xf32>
    %17 = vector.broadcast %2 : vector<1x128xf32> to vector<8x128xf32>
    %18 = arith.addf %16, %17 : vector<8x128xf32>
    %cst_16 = arith.constant 0.000000e+00 : f32
    %19 = vector.broadcast %cst_16 : f32 to vector<8x128xf32>
    %20 = arith.maximumf %18, %19 : vector<8x128xf32>
    %21 = arith.truncf %20 : vector<8x128xf32> to vector<8x128xbf16>
    %cst_17 = arith.constant dense<0.000000e+00> : vector<8x128xf32>
    %22 = tpu.matmul %21, %3, %cst_17 {dimension_numbers = #tpu.dot_dimension_numbers<[1], [0], [0], [1], [0, 0, 1, 1], [], []>} : vector<8x128xbf16>, vector<128x128xbf16>, vector<8x128xf32> -> vector<8x128xf32>
    %23 = vector.broadcast %4 : vector<1x128xf32> to vector<8x128xf32>
    %24 = arith.addf %22, %23 : vector<8x128xf32>
    %cst_18 = arith.constant 0.000000e+00 : f32
    %25 = vector.broadcast %cst_18 : f32 to vector<8x128xf32>
    %26 = arith.maximumf %24, %25 : vector<8x128xf32>
    %27 = arith.truncf %26 : vector<8x128xf32> to vector<8x128xbf16>
    %cst_19 = arith.constant dense<0.000000e+00> : vector<8x128xf32>
    %28 = tpu.matmul %27, %5, %cst_19 {dimension_numbers = #tpu.dot_dimension_numbers<[1], [0], [0], [1], [0, 0, 1, 1], [], []>} : vector<8x128xbf16>, vector<128x128xbf16>, vector<8x128xf32> -> vector<8x128xf32>
    %29 = vector.broadcast %6 : vector<1x128xf32> to vector<8x128xf32>
    %30 = arith.addf %28, %29 : vector<8x128xf32>
    %31 = arith.index_cast %7 : i32 to index
    %c0_20 = arith.constant 0 : index
    %32 = vector.load %arg10[%31, %c0_20] : memref<8x128xf32, #tpu.memory_space<vmem>>, vector<8x128xf32>
    tpu.vector_store %arg10[%31, %c0_20], %30 {strides = array<i32>} : memref<8x128xf32, #tpu.memory_space<vmem>>, vector<8x128xf32>,
    %c1_i32 = arith.constant 1 : i32
    return
  }
  func.func @transform_0(%arg0: i32) -> (i32, i32) {
    %c0_i32 = arith.constant 0 : i32
    %c0_i32_0 = arith.constant 0 : i32
    return %arg0, %c0_i32 : i32, i32
  }
  func.func @transform_1(%arg0: i32) -> (i32, i32) {
    %c0_i32 = arith.constant 0 : i32
    %c0_i32_0 = arith.constant 0 : i32
    return %arg0, %c0_i32 : i32, i32
  }
  func.func @transform_2(%arg0: i32) -> (i32, i32) {
    %c0_i32 = arith.constant 0 : i32
    %c0_i32_0 = arith.constant 0 : i32
    %c0_i32_1 = arith.constant 0 : i32
    return %c0_i32, %c0_i32_0 : i32, i32
  }
  func.func @transform_3(%arg0: i32) -> (i32, i32) {
    %c0_i32 = arith.constant 0 : i32
    %c0_i32_0 = arith.constant 0 : i32
    %c0_i32_1 = arith.constant 0 : i32
    return %c0_i32, %c0_i32_0 : i32, i32
  }
  func.func @transform_4(%arg0: i32) -> (i32, i32) {
    %c0_i32 = arith.constant 0 : i32
    %c0_i32_0 = arith.constant 0 : i32
    %c0_i32_1 = arith.constant 0 : i32
    return %c0_i32, %c0_i32_0 : i32, i32
  }
  func.func @transform_5(%arg0: i32) -> (i32, i32) {
    %c0_i32 = arith.constant 0 : i32
    %c0_i32_0 = arith.constant 0 : i32
    %c0_i32_1 = arith.constant 0 : i32
    return %c0_i32, %c0_i32_0 : i32, i32
  }
  func.func @transform_6(%arg0: i32) -> (i32, i32) {
    %c0_i32 = arith.constant 0 : i32
    %c0_i32_0 = arith.constant 0 : i32
    %c0_i32_1 = arith.constant 0 : i32
    return %c0_i32, %c0_i32_0 : i32, i32
  }
  func.func @transform_7(%arg0: i32) -> (i32, i32) {
    %c0_i32 = arith.constant 0 : i32
    %c0_i32_0 = arith.constant 0 : i32
    %c0_i32_1 = arith.constant 0 : i32
    return %c0_i32, %c0_i32_0 : i32, i32
  }
  func.func @transform_8(%arg0: i32) -> (i32, i32) {
    %c0_i32 = arith.constant 0 : i32
    %c0_i32_0 = arith.constant 0 : i32
    %c0_i32_1 = arith.constant 0 : i32
    return %c0_i32, %c0_i32_0 : i32, i32
  }
  func.func @transform_9(%arg0: i32) -> (i32, i32) {
    %c0_i32 = arith.constant 0 : i32
    %c0_i32_0 = arith.constant 0 : i32
    return %arg0, %c0_i32 : i32, i32
  }
}

</mosaic_0001>

<bundles_post_ra>
// kernel: tpu_custom_call.1
= control target key start
LH: loop header
LB: loop body
LE: loop exit
PB: predicated region body
PF: predicated region fallthrough
CT: control target
= control target key end

     0   :  { %14 = vsyncpa [#allocation3], 0  ;;  %s831_s0 = inlined_call_operand.hbm [shape: f32[8,16], index: 0, kind: input, shape index: {}]   ;;  %s832_s1 = inlined_call_operand.hbm [shape: f32[8,8], index: 1, kind: input, shape index: {}]   ;;  %s833_s2 = inlined_call_operand.hbm [shape: bf16[16,128], index: 2, kind: input, shape index: {}]   ;;  %s834_s3 = inlined_call_operand.vmem [shape: bf16[8,128], index: 3, kind: input, shape index: {}]   ;;  %s835_s4 = inlined_call_operand.vmem [shape: f32[1,128], index: 4, kind: input, shape index: {}]   ;;  %s836_s5 = inlined_call_operand.hbm [shape: bf16[128,128], index: 5, kind: input, shape index: {}]   ;;  %s837_s6 = inlined_call_operand.vmem [shape: f32[1,128], index: 6, kind: input, shape index: {}]   ;;  %s838_s7 = inlined_call_operand.hbm [shape: bf16[128,128], index: 7, kind: input, shape index: {}]   ;;  %s839_s8 = inlined_call_operand.vmem [shape: f32[1,128], index: 8, kind: input, shape index: {}]   ;;  %s840_s9 = inlined_call_operand.hbm [shape: f32[8,128], index: 9, kind: output, shape index: {}]  }
   0x1   :  { %15 = vsyncpa [#allocation6], 0 }
   0x2   :  { %16 = vsyncpa [#allocation9], 0 }
   0x3   :  { %17 = vsyncpa [#allocation4], 0  ;;  %s706_s30 = smov [#allocation5]  }
   0x4   :  { %s34_s10 = sshll.u32 %s706_s30, 4  ;;  %s35_s10 = int_to_ptr.vmem [resolvable:$true] %s34_s10 }
   0x5   :  { %s586_s11 = scalar_lea.vmem %s35_s10, 128  ;;  %p591_p1 = scmp.lt.s32.totalorder %s35_s10, %s35_s10 }
   0x6   :  { %p587_p0 = scmp.ne.s32.totalorder %s35_s10, %s586_s11  ;;  %p592_p2 = scmp.lt.s32.totalorder %s586_s11, %s586_s11 }
   0x8   :  { %p593_p3 = por %p592_p2, %p591_p1 }
   0xa   :  { %p594_p4 = pnand %p593_p3, %p587_p0 }
   0xc   :  { %597 = shalt.err (!%p594_p4)
}
   0xd   :  { %37 = dma.hbm_to_vmem [thread:$0]  %s832_s1, 128, %s35_s10, [#allocation6]  }
   0xe   :  { %s707_s14 = smov [#allocation8]   ;;  %s708_s16 = smov [#allocation2]  }
   0xf   :  { %s59_s15 = sshll.u32 %s707_s14, 4  ;;  %s24_s17 = sshll.u32 %s708_s16, 4  ;;  %s60_s15 = int_to_ptr.vmem [resolvable:$true] %s59_s15  ;;  %s25_s17 = int_to_ptr.vmem [resolvable:$true] %s24_s17 }
  0x10   :  { %s606_s18 = scalar_lea.vmem %s60_s15, 1024  ;;  %p611_p6 = scmp.lt.s32.totalorder %s60_s15, %s60_s15 }
  0x11   :  { %p607_p5 = scmp.ne.s32.totalorder %s60_s15, %s606_s18  ;;  %p612_p7 = scmp.lt.s32.totalorder %s606_s18, %s606_s18 }
  0x13   :  { %p613_p8 = por %p612_p7, %p611_p6 }
  0x15   :  { %p614_p9 = pnand %p613_p8, %p607_p5 }
  0x17   :  { %617 = shalt.err (!%p614_p9)
}
  0x18   :  { %s709_s19 = smov 64   ;;  %s710_s20 = smov 4  }
  0x19   :  { %65 = dma.hbm_to_vmem [thread:$0]  %s836_s5, 1024, %s60_s15, [#allocation9], %s709_s19, %s709_s19, %s710_s20  }
  0x1a   :  { %s626_s1 = scalar_lea.vmem %s25_s17, 128  ;;  %p631_p11 = scmp.lt.s32.totalorder %s25_s17, %s25_s17 }
  0x1b   :  { %p627_p10 = scmp.ne.s32.totalorder %s25_s17, %s626_s1  ;;  %p632_p12 = scmp.lt.s32.totalorder %s626_s1, %s626_s1 }
  0x1d   :  { %p633_p13 = por %p632_p12, %p631_p11 }
  0x1f   :  { %p634_p0 = pnand %p633_p13, %p627_p10 }
  0x21   :  { %637 = shalt.err (!%p634_p0)
}
  0x22   :  { %27 = dma.hbm_to_vmem [thread:$0]  %s831_s0, 128, %s25_s17, [#allocation3]  }
  0x23   :  { %s711_s25 = smov [#allocation7]   ;;  %s712_s27 = smov [#allocation10]  }
  0x24   :  { %s43_s26 = sshll.u32 %s711_s25, 4  ;;  %s73_s28 = sshll.u32 %s712_s27, 4  ;;  %s44_s26 = int_to_ptr.vmem [resolvable:$true] %s43_s26  ;;  %s74_s28 = int_to_ptr.vmem [resolvable:$true] %s73_s28 }
  0x25   :  { %s646_s29 = scalar_lea.vmem %s44_s26, 128  ;;  %p651_p2 = scmp.lt.s32.totalorder %s44_s26, %s44_s26 }
  0x26   :  { %p647_p1 = scmp.ne.s32.totalorder %s44_s26, %s646_s29  ;;  %p652_p3 = scmp.lt.s32.totalorder %s646_s29, %s646_s29 }
  0x28   :  { %p653_p4 = por %p652_p3, %p651_p2 }
  0x2a   :  { %p654_p5 = pnand %p653_p4, %p647_p1 }
  0x2c   :  { %657 = shalt.err (!%p654_p5)
}
  0x2d   :  { %49 = dma.hbm_to_vmem [thread:$0]  %s833_s2, 128, %s44_s26, [#allocation6], %s709_s19, %s709_s19, %s710_s20  }
  0x2e   :  { %s666_s0 = scalar_lea.vmem %s74_s28, 1024  ;;  %p671_p7 = scmp.lt.s32.totalorder %s74_s28, %s74_s28 }
  0x2f   :  { %p667_p6 = scmp.ne.s32.totalorder %s74_s28, %s666_s0  ;;  %p672_p8 = scmp.lt.s32.totalorder %s666_s0, %s666_s0 }
  0x31   :  { %p673_p9 = por %p672_p8, %p671_p7 }
  0x33   :  { %p674_p10 = pnand %p673_p9, %p667_p6 }
  0x35   :  { %677 = shalt.err (!%p674_p10)
}
  0x36   :  { %79 = dma.hbm_to_vmem [thread:$0]  %s838_s7, 1024, %s74_s28, [#allocation9], %s709_s19, %s709_s19, %s710_s20  }
  0x37   :  { %698 = dma.done.wait [#allocation3], 128  }
  0x38   :  { %699 = vsyncadd [#allocation3], 4294967168 }
  0x39   :  { %700 = dma.done.wait [#allocation6], 256  }
  0x3a   :  { %701 = vsyncadd [#allocation6], 4294967040 }
  0x3b   :  { %702 = dma.done.wait [#allocation9], 2048  }
  0x3c   :  { %703 = vsyncadd [#allocation9], 4294965248  ;;  %v713_v0 = vmov 0.0   ;;  %vm714_vm0 = vmmov 0   ;;  %vm144_vm1 = vcmask 1043456   ;;  %v561_v3 = vld [vmem:[#allocation7] sm:$0xff]  }
  0x3d   :  { %499 = vmatprep.subr.bf16.mxu0 %v713_v0  ;;  %505 = vmatprep.subr.bf16.mxu1 %v713_v0  ;;  %v100_v1 = vld [vmem:[%s834_s3] sm:$0xf]  ;;  %v138_v4 = vld [vmem:[#allocation5] sm:$0xff]  ;;  %vm140_vm2 = vcmask 64512   ;;  %v562_v8 = vld [vmem:[#allocation8 + $0x38] sm:$0xff]   ;;  %vm194_vm3 = vcmask 130048  }
  0x3e   :  { %501 = vmatprep.mubr.msk.bf16.mxu0 %vm714_vm0, %v713_v0  ;;  %507 = vmatprep.mubr.msk.bf16.mxu1 %vm714_vm0, %v713_v0  ;;  %v146_v2 = vsel %vm144_vm1, %v100_v1, 0  ;;  %v136_v5 = vld [vmem:[#allocation2] sm:$0xff]  ;;  %v139_v6 = vpack.c.bf16 %v138_v4, %v138_v4  ;;  %v563_v9 = vld [vmem:[#allocation8 + $0x30] sm:$0xff]   ;;  %v565_v11 = vld [vmem:[#allocation8 + $0x20] sm:$0xff]   ;;  %s715_s16 = smov [#allocation11]  }
  0x3f   :  { %500 = vmatpush3.bf16.msra.mxu0 %v146_v2  ;;  %v137_v7 = vpack.c.bf16 %v136_v5, %v136_v5  ;;  %506 = vmatpush3.bf16.msra.mxu1 %v561_v3  ;;  %v564_v10 = vld [vmem:[#allocation8 + $0x28] sm:$0xff]   ;;  %v566_v12 = vld [vmem:[#allocation8 + $0x18] sm:$0xff]   ;;  %v567_v13 = vld [vmem:[#allocation8 + $0x10] sm:$0xff]   ;;  %s444_s17 = sshll.u32 %s715_s16, 4  ;;  %s445_s17 = int_to_ptr.vmem [resolvable:$true] %s444_s17 }
  0x40   :  { %511 = vmatprep.subr.bf16.mxu0 %v713_v0  ;;  %531 = vmatprep.subr.bf16.mxu1 %v713_v0  ;;  %v568_v14 = vld [vmem:[#allocation8 + $0x8] sm:$0xff]   ;;  %v569_v15 = vld [vmem:[#allocation8] sm:$0xff]   ;;  %v570_v16 = vld [vmem:[#allocation10 + $0x38] sm:$0xff]   ;;  %p683_p12 = scmp.lt.s32.totalorder %s445_s17, %s445_s17 }
  0x41   :  { %v571_v17 = vld [vmem:[#allocation10 + $0x30] sm:$0xff]   ;;  %v572_v18 = vld [vmem:[#allocation10 + $0x28] sm:$0xff]   ;;  %v573_v19 = vld [vmem:[#allocation10 + $0x20] sm:$0xff]  }
  0x42   :  { %502 = vmatmul.mubr.msk.bf16.vlgmr.msra.gmra.mxu0 %vm140_vm2, %v139_v6  ;;  %508 = vmatmul.mubr.msk.bf16.vlgmr.msra.gmra.mxu1 %vm194_vm3, %v137_v7  ;;  %v574_v20 = vld [vmem:[#allocation10 + $0x18] sm:$0xff]   ;;  %v575_v21 = vld [vmem:[#allocation10 + $0x10] sm:$0xff]   ;;  %v458_v23 = vld [vmem:[%s835_s4] ss:$0 sm:$0xff] }
  0x43   :  { %512 = vmatpush3.bf16.msra.mxu0 %v562_v8  ;;  %527 = vmatprep.mubr.msk.bf16.mxu0 %vm714_vm0, %v713_v0  ;;  %v576_v35 = vld [vmem:[#allocation10 + $0x8] sm:$0xff]   ;;  %v577_v36 = vld [vmem:[#allocation10] sm:$0xff]  }
  0x44   :  { %513 = vmatprep.subr.bf16.mxu0 %v713_v0  ;;  %547 = vmatprep.mubr.msk.bf16.mxu1 %vm714_vm0, %v713_v0  ;;  %v459_v37 = vld [vmem:[%s837_s6] ss:$0 sm:$0xff]  ;;  %s678_s6 = scalar_lea.vmem %s445_s17, 128 }
  0x45   :  { %532 = vmatpush3.bf16.msra.mxu1 %v570_v16  ;;  %v468_v45 = vld [vmem:[%s839_s8] ss:$0 sm:$0xff]  ;;  %p679_p11 = scmp.ne.s32.totalorder %s445_s17, %s678_s6  ;;  %p684_p13 = scmp.lt.s32.totalorder %s678_s6, %s678_s6 }
  0x46   :  { %533 = vmatprep.subr.bf16.mxu1 %v713_v0 }
  0x47   :  { %514 = vmatpush3.bf16.msra.mxu0 %v563_v9  ;;  %p685_p0 = por %p684_p13, %p683_p12 }
  0x48   :  { %515 = vmatprep.subr.bf16.mxu0 %v713_v0 }
  0x49   :  { %534 = vmatpush3.bf16.msra.mxu1 %v571_v17  ;;  %p686_p1 = pnand %p685_p0, %p679_p11 }
  0x4a   :  { %535 = vmatprep.subr.bf16.mxu1 %v713_v0 }
  0x4b   :  { %516 = vmatpush3.bf16.msra.mxu0 %v564_v10 }
  0x4c   :  { %517 = vmatprep.subr.bf16.mxu0 %v713_v0 }
  0x4d   :  { %536 = vmatpush3.bf16.msra.mxu1 %v572_v18 }
  0x4e   :  { %537 = vmatprep.subr.bf16.mxu1 %v713_v0 }
  0x4f   :  { %518 = vmatpush3.bf16.msra.mxu0 %v565_v11 }
  0x50   :  { %519 = vmatprep.subr.bf16.mxu0 %v713_v0 }
  0x51   :  { %538 = vmatpush3.bf16.msra.mxu1 %v573_v19 }
  0x52   :  { %539 = vmatprep.subr.bf16.mxu1 %v713_v0 }
  0x53   :  { %520 = vmatpush3.bf16.msra.mxu0 %v566_v12 }
  0x54   :  { %521 = vmatprep.subr.bf16.mxu0 %v713_v0 }
  0x55   :  { %540 = vmatpush3.bf16.msra.mxu1 %v574_v20 }
  0x56   :  { %541 = vmatprep.subr.bf16.mxu1 %v713_v0 }
  0x57   :  { %522 = vmatpush3.bf16.msra.mxu0 %v567_v13 }
  0x58   :  { %523 = vmatprep.subr.bf16.mxu0 %v713_v0 }
  0x59   :  { %542 = vmatpush3.bf16.msra.mxu1 %v575_v21 }
  0x5a   :  { %543 = vmatprep.subr.bf16.mxu1 %v713_v0 }
  0x5b   :  { %524 = vmatpush3.bf16.msra.mxu0 %v568_v14 }
  0x5c   :  { %525 = vmatprep.subr.bf16.mxu0 %v713_v0 }
  0x5d   :  { %544 = vmatpush3.bf16.msra.mxu1 %v576_v35 }
  0x5e   :  { %545 = vmatprep.subr.bf16.mxu1 %v713_v0 }
  0x5f   :  { %526 = vmatpush3.bf16.msra.mxu0 %v569_v15 }
  0x61   :  { %546 = vmatpush3.bf16.msra.mxu1 %v577_v36 }
 0x102   :  { %v182_v22 = vpop.f32.mrf.mxu0  ;;  %v232_v24 = vpop.f32.mrf.mxu1 }
 0x103   :  { %v233_v25 = vadd.f32 %v232_v24, %v182_v22 }
 0x104   :  { %v503_v26 = vpop.f32.mrf.mxu0  ;;  %v509_v27 = vpop.f32.mrf.mxu1 }
 0x105   :  { %v244_v28 = vadd.f32 %v458_v23, %v233_v25 }
 0x106   :  { %v185_v29 = vpop.f32.mrf.mxu0  ;;  %v235_v30 = vpop.f32.mrf.mxu1 }
 0x107   :  { %v245_v31 = vmax.f32 %v244_v28, 0.0 }
 0x108   :  { %v504_v32 = vpop.f32.mrf.mxu0  ;;  %v510_v33 = vpop.f32.mrf.mxu1 }
 0x109   :  { %v246_v34 = vpack.c.bf16 %v245_v31, %v245_v31 }
 0x10b   :  { %528 = vmatmul.mubr.bf16.vlgmr.msra.gmra.mxu0 %v246_v34 }
 0x1cb   :  { %v335_v38 = vpop.f32.mrf.mxu0 }
 0x1cc   :  { %v336_v39 = vadd.f32 %v459_v37, %v335_v38 }
 0x1cd   :  { %v529_v40 = vpop.f32.mrf.mxu0 }
 0x1ce   :  { %v341_v41 = vmax.f32 %v336_v39, 0.0 }
 0x1cf   :  { %v338_v42 = vpop.f32.mrf.mxu0 }
 0x1d0   :  { %v342_v43 = vpack.c.bf16 %v341_v41, %v341_v41 }
 0x1d1   :  { %v530_v44 = vpop.f32.mrf.mxu0 }
 0x1d2   :  { %548 = vmatmul.mubr.bf16.vlgmr.msra.gmra.mxu1 %v342_v43 }
 0x292   :  { %v431_v46 = vpop.f32.mrf.mxu1 }
 0x293   :  { %v432_v47 = vadd.f32 %v468_v45, %v431_v46 }
 0x294   :  { %v549_v48 = vpop.f32.mrf.mxu1 }
 0x295   :  { %437 = vst [vmem:[#allocation11] sm:$0xff] %v432_v47 }
 0x296   :  { %v434_v49 = vpop.f32.mrf.mxu1 }
 0x297   :  { %689 = shalt.err (!%p686_p1)
}
 0x298   :  { %447 = dma.vmem_to_hbm [thread:$0]  %s445_s17, 128, %s840_s9, [#allocation4]   ;;  %v550_v50 = vpop.f32.mrf.mxu1 }
 0x299   :  { %704 = dma.done.wait [#allocation4], 128  }
 0x29a   :  { %705 = vsyncadd [#allocation4], 4294967168 }
 0x29b   :  { %451 = vsyncpa [#allocation3], 1 }
 0x29c   :  { %452 = vsyncpa [#allocation6], 1 }
 0x29d   :  { %453 = vsyncpa [#allocation9], 1 }
 0x29e   :  { %454 = vsyncpa [#allocation4], 1 }

</bundles_post_ra>
